<compile_context>
chip_gen: v7x
topology: tpu7x:2x2x1
jax: 0.10.0
libtpu: 0.0.40
codegen_flags: <defaults>
</compile_context>

<pallas_src>
import functools

import numpy as np

import jax
import jax.numpy as jnp
from jax.experimental import pallas as pl
from jax.experimental.pallas import tpu as pltpu  # noqa: F401  (CompilerParams for scaled-up shapes)


# ------------------------------ Pallas kernel -------------------------------


def _tcn_fused_kernel(*refs, K, n_blocks, has_down):
    """Fully fused TCN_TSF forward.

    Ref order:
      x                                  (C0, N*L)   activations, batch/time on lanes
      per block i:
        w1  (K*Cout, Cin)   stacked conv1 taps      b1 (Cout, 1)
        w2  (K*Cout, Cout)  stacked conv2 taps      b2 (Cout, 1)
        [wd (Cout, Cin)     1x1 downsample          bd (Cout, 1)]   if has_down[i]
        [S  (K-1, NL, NL)   baked causal shift+mask operators]      if K > 1
      sel (NL, N)           last-timestep selection matrix
      wh  (2*O, Cout)       stacked linear_0/linear_1 weights
      bh  (2*O, 1)
      out (2*O, N)
    """
    it = iter(refs)
    x_ref = next(it)
    blocks = []
    for i in range(n_blocks):
        w1_ref, b1_ref, w2_ref, b2_ref = next(it), next(it), next(it), next(it)
        wd_ref = bd_ref = None
        if has_down[i]:
            wd_ref, bd_ref = next(it), next(it)
        s_ref = next(it) if K > 1 else None
        blocks.append((w1_ref, b1_ref, w2_ref, b2_ref, wd_ref, bd_ref, s_ref))
    sel_ref, wh_ref, bh_ref = next(it), next(it), next(it)
    o_ref = next(it)

    # Activations stay in vregs/VMEM for the whole network (no HBM round-trips).
    h = x_ref[...].astype(jnp.float32)                              # (C0, NL)

    for (w1_ref, b1_ref, w2_ref, b2_ref, wd_ref, bd_ref, s_ref) in blocks:
        cout = b1_ref.shape[0]

        def conv_relu(a, w_ref, b_ref, cout=cout, s_ref=s_ref):
            # All K taps in ONE stacked-weight MXU matmul.
            z = jnp.dot(w_ref[...], a, preferred_element_type=jnp.float32)  # (K*Cout, NL)
            acc = z[(K - 1) * cout:K * cout, :] + b_ref[...]                # zero-shift tap
            for j in range(K - 1):
                # Causal shift + batch-boundary mask folded into a baked
                # permutation matmul (runs on the otherwise-idle MXU; exact).
                acc = acc + jnp.dot(z[j * cout:(j + 1) * cout, :], s_ref[j],
                                    preferred_element_type=jnp.float32)
            return jnp.maximum(acc, 0.0)

        h1 = conv_relu(h, w1_ref, b1_ref)                           # (Cout, NL)
        h2 = conv_relu(h1, w2_ref, b2_ref)                          # (Cout, NL)
        if wd_ref is not None:
            res = jnp.dot(wd_ref[...], h,
                          preferred_element_type=jnp.float32) + bd_ref[...]
        else:
            res = h
        h = jnp.maximum(h2 + res, 0.0)                              # (Cout, NL)

    # y[:, :, -1] gather as a selection matmul, then both linear heads fused.
    y_last = jnp.dot(h, sel_ref[...], preferred_element_type=jnp.float32)   # (Cout, N)
    out = jnp.dot(wh_ref[...], y_last,
                  preferred_element_type=jnp.float32) + bh_ref[...]         # (2*O, N)
    o_ref[...] = out.astype(o_ref.dtype)


# ----------------------------- Pallas wrappers -------------------------------


def _full_spec(shape):
    # whole array as a single block (no grid)
    return pl.BlockSpec(shape, lambda: (0,) * len(shape))


def _shift_matrix(s, N, L):
    """(NL, NL) operator: (a @ S)[:, n*L+l] = a[:, n*L+l-s] if l >= s else 0."""
    NL = N * L
    src = np.arange(NL)[:, None]
    dst = np.arange(NL)[None, :]
    m = (src == dst - s) & ((dst % L) >= s)
    return jnp.asarray(m, dtype=jnp.float32)


def _last_step_selector(N, L):
    """(NL, N) operator: (y @ sel)[:, n] = y[:, n*L + (L-1)]."""
    NL = N * L
    rows = np.arange(NL)[:, None]
    cols = np.arange(N)[None, :]
    return jnp.asarray(rows == cols * L + (L - 1), dtype=jnp.float32)


def _pack_inputs(params, *, N, L, K):
    """Precompute all constant kernel inputs (stacked weights, shift/sel ops)."""
    inputs = []
    has_down = []
    for blk in params["blocks"]:
        cout = int(blk["b1"].shape[0])
        cin = int(blk["w1"].shape[2])
        inputs += [blk["w1"].reshape(K * cout, cin),    # stacked conv1 taps
                   blk["b1"].reshape(cout, 1),
                   blk["w2"].reshape(K * cout, cout),   # stacked conv2 taps
                   blk["b2"].reshape(cout, 1)]
        hd = blk["wd"] is not None
        has_down.append(hd)
        if hd:
            inputs += [blk["wd"], blk["bd"].reshape(cout, 1)]
        if K > 1:
            d = int(blk["dilation"])
            S = jnp.stack([_shift_matrix((K - 1 - j) * d, N, L)
                           for j in range(K - 1)], axis=0)          # (K-1, NL, NL)
            inputs.append(S)
    O2 = int(params["bh"].shape[0])
    inputs += [_last_step_selector(N, L),
               jnp.transpose(params["Wh"]),                         # (2*O, Cout)
               params["bh"].reshape(O2, 1)]
    return inputs, tuple(has_down)


@functools.partial(jax.jit, static_argnums=(2, 3, 4, 5))
def _run_fused(x, const_inputs, K, n_blocks, has_down, O2):
    N, C0, L = x.shape
    # one-time layout glue: NCL -> channel-major, batch/time folded on lanes
    h0 = jnp.transpose(x, (1, 0, 2)).reshape(C0, N * L)
    all_inputs = (h0,) + const_inputs
    out_shape = jax.ShapeDtypeStruct((O2, N), x.dtype)
    kernel = functools.partial(_tcn_fused_kernel, K=K, n_blocks=n_blocks,
                               has_down=has_down)
    out = pl.pallas_call(
        kernel,
        out_shape=out_shape,
        in_specs=[_full_spec(a.shape) for a in all_inputs],
        out_specs=_full_spec((O2, N)),
    )(*all_inputs)
    return out.T.reshape(N, 2, O2 // 2)


def tcn_tsf_forward(x, params, *, kernel_size):
    """x: (N, input_size, L) -> (N, 2, output_size). Matches TCN_TSF.forward."""
    N, _, L = x.shape
    const_inputs, has_down = _pack_inputs(params, N=N, L=L, K=kernel_size)
    O2 = int(params["bh"].shape[0])
    return _run_fused(x, tuple(const_inputs), kernel_size,
                      len(params["blocks"]), has_down, O2)


# --------------------------- pure-JAX reference ------------------------------


def _ref_causal_conv(x, w, b, d):
    # x: (N, Cin, L), w: (K, Cout, Cin), b: (Cout,)
    K = w.shape[0]
    pad = (K - 1) * d
    L = x.shape[2]
    xp = jnp.pad(x, ((0, 0), (0, 0), (pad, 0)))
    y = jnp.zeros((x.shape[0], w.shape[1], L), jnp.float32) + b[None, :, None]
    for j in range(K):
        y = y + jnp.einsum("oc,ncl->nol", w[j], xp[:, :, j * d: j * d + L])
    return y


def reference_forward(x, params):
    h = x
    for blk in params["blocks"]:
        d = blk["dilation"]
        h1 = jnp.maximum(_ref_causal_conv(h, blk["w1"], blk["b1"], d), 0.0)
        h2 = jnp.maximum(_ref_causal_conv(h1, blk["w2"], blk["b2"], d), 0.0)
        if blk["wd"] is not None:
            res = jnp.einsum("oc,ncl->nol", blk["wd"], h) + blk["bd"][None, :, None]
        else:
            res = h
        h = jnp.maximum(h2 + res, 0.0)
    y_last = h[:, :, -1]                                 # (N, C)
    out = y_last @ params["Wh"] + params["bh"]           # (N, 2*O)
    return out.reshape(x.shape[0], 2, -1)                # (N, 2, O)


# ------------------------------ initialization -------------------------------


def init_params(key, input_size, output_size, num_channels, kernel_size):
    blocks = []
    for i, out_ch in enumerate(num_channels):
        in_ch = input_size if i == 0 else num_channels[i - 1]
        key, k1, k2, k3, k4, k5, k6 = jax.random.split(key, 7)
        blocks.append(dict(
            # effective weight_norm weight == v when g = ||v|| (default init)
            w1=0.1 * jax.random.normal(k1, (kernel_size, out_ch, in_ch), jnp.float32),
            b1=0.1 * jax.random.normal(k2, (out_ch,), jnp.float32),
            w2=0.1 * jax.random.normal(k3, (kernel_size, out_ch, out_ch), jnp.float32),
            b2=0.1 * jax.random.normal(k4, (out_ch,), jnp.float32),
            wd=(0.1 * jax.random.normal(k5, (out_ch, in_ch), jnp.float32)
                if in_ch != out_ch else None),
            bd=(0.1 * jax.random.normal(k6, (out_ch,), jnp.float32)
                if in_ch != out_ch else None),
            dilation=2 ** i,
        ))
    key, kw, kb = jax.random.split(key, 3)
    # stacked heads: columns [0:O] = linear_0^T, [O:2O] = linear_1^T
    Wh = 0.1 * jax.random.normal(kw, (num_channels[-1], 2 * output_size), jnp.float32)
    bh = 0.1 * jax.random.normal(kb, (2 * output_size,), jnp.float32)
    return dict(blocks=blocks, Wh=Wh, bh=bh)


# ----------------------------------- main ------------------------------------

if __name__ == "__main__":
    input_size, output_size = 4, 3
    num_channels = [8, 8]
    kernel_size = 2
    dropout = 0.2  # eval-mode dropout == identity
    N, L = 2, 16

    key = jax.random.PRNGKey(0)
    key, kx = jax.random.split(key)
    params = init_params(key, input_size, output_size, num_channels, kernel_size)
    x = jax.random.normal(kx, (N, input_size, L), jnp.float32)

    out = tcn_tsf_forward(x, params, kernel_size=kernel_size)
    out = jax.block_until_ready(out)

    ref = reference_forward(x, params)
    assert out.shape == (N, 2, output_size), out.shape
    assert jnp.allclose(out, ref, atol=1e-4, rtol=1e-4), (out, ref)

    print("KERNEL_OK")
</pallas_src>

<mosaic_0001>
module attributes {stable_mosaic.version = 11 : i64} {
  func.func @_tcn_fused_kernel(%arg0: memref<4x32xf32, #tpu.memory_space<vmem>>, %arg1: memref<16x4xf32, #tpu.memory_space<vmem>>, %arg2: memref<8x1xf32, #tpu.memory_space<vmem>>, %arg3: memref<16x8xf32, #tpu.memory_space<vmem>>, %arg4: memref<8x1xf32, #tpu.memory_space<vmem>>, %arg5: memref<8x4xf32, #tpu.memory_space<vmem>>, %arg6: memref<8x1xf32, #tpu.memory_space<vmem>>, %arg7: memref<1x32x32xf32, #tpu.memory_space<vmem>>, %arg8: memref<16x8xf32, #tpu.memory_space<vmem>>, %arg9: memref<8x1xf32, #tpu.memory_space<vmem>>, %arg10: memref<16x8xf32, #tpu.memory_space<vmem>>, %arg11: memref<8x1xf32, #tpu.memory_space<vmem>>, %arg12: memref<1x32x32xf32, #tpu.memory_space<vmem>>, %arg13: memref<32x2xf32, #tpu.memory_space<vmem>>, %arg14: memref<6x8xf32, #tpu.memory_space<vmem>>, %arg15: memref<6x1xf32, #tpu.memory_space<vmem>>, %arg16: memref<6x2xf32, #tpu.memory_space<vmem>>) attributes {dimension_semantics = [], scalar_prefetch = 0 : i64, scratch_operands = 0 : i64, tpu.core_type = #tpu.core_type<tc>} {
    %c0 = arith.constant 0 : index
    %c0_0 = arith.constant 0 : index
    %0 = vector.load %arg0[%c0, %c0_0] : memref<4x32xf32, #tpu.memory_space<vmem>>, vector<4x32xf32>
    %c0_1 = arith.constant 0 : index
    %c0_2 = arith.constant 0 : index
    %1 = vector.load %arg1[%c0_1, %c0_2] : memref<16x4xf32, #tpu.memory_space<vmem>>, vector<16x4xf32>
    %cst = arith.constant dense<0.000000e+00> : vector<16x32xf32>
    %2 = tpu.matmul %1, %0, %cst {dimension_numbers = #tpu.dot_dimension_numbers<[1], [0], [0], [1], [0, 0, 1, 1], [], []>} : vector<16x4xf32>, vector<4x32xf32>, vector<16x32xf32> -> vector<16x32xf32>
    %3 = vector.extract_strided_slice %2 {offsets = [8, 0], sizes = [8, 32], strides = [1, 1]} : vector<16x32xf32> to vector<8x32xf32>
    %c0_3 = arith.constant 0 : index
    %c0_4 = arith.constant 0 : index
    %4 = vector.load %arg2[%c0_3, %c0_4] : memref<8x1xf32, #tpu.memory_space<vmem>>, vector<8x1xf32>
    %5 = vector.broadcast %4 : vector<8x1xf32> to vector<8x32xf32>
    %6 = arith.addf %3, %5 : vector<8x32xf32>
    %7 = vector.extract_strided_slice %2 {offsets = [0, 0], sizes = [8, 32], strides = [1, 1]} : vector<16x32xf32> to vector<8x32xf32>
    %c0_5 = arith.constant 0 : index
    %c0_6 = arith.constant 0 : index
    %c0_7 = arith.constant 0 : index
    %8 = vector.load %arg7[%c0_5, %c0_6, %c0_7] : memref<1x32x32xf32, #tpu.memory_space<vmem>>, vector<1x32x32xf32>
    %9 = vector.shape_cast %8 : vector<1x32x32xf32> to vector<32x32xf32>
    %cst_8 = arith.constant dense<0.000000e+00> : vector<8x32xf32>
    %10 = tpu.matmul %7, %9, %cst_8 {dimension_numbers = #tpu.dot_dimension_numbers<[1], [0], [0], [1], [0, 0, 1, 1], [], []>} : vector<8x32xf32>, vector<32x32xf32>, vector<8x32xf32> -> vector<8x32xf32>
    %11 = arith.addf %6, %10 : vector<8x32xf32>
    %cst_9 = arith.constant 0.000000e+00 : f32
    %12 = vector.broadcast %cst_9 : f32 to vector<8x32xf32>
    %13 = arith.maximumf %11, %12 : vector<8x32xf32>
    %c0_10 = arith.constant 0 : index
    %c0_11 = arith.constant 0 : index
    %14 = vector.load %arg3[%c0_10, %c0_11] : memref<16x8xf32, #tpu.memory_space<vmem>>, vector<16x8xf32>
    %cst_12 = arith.constant dense<0.000000e+00> : vector<16x32xf32>
    %15 = tpu.matmul %14, %13, %cst_12 {dimension_numbers = #tpu.dot_dimension_numbers<[1], [0], [0], [1], [0, 0, 1, 1], [], []>} : vector<16x8xf32>, vector<8x32xf32>, vector<16x32xf32> -> vector<16x32xf32>
    %16 = vector.extract_strided_slice %15 {offsets = [8, 0], sizes = [8, 32], strides = [1, 1]} : vector<16x32xf32> to vector<8x32xf32>
    %c0_13 = arith.constant 0 : index
    %c0_14 = arith.constant 0 : index
    %17 = vector.load %arg4[%c0_13, %c0_14] : memref<8x1xf32, #tpu.memory_space<vmem>>, vector<8x1xf32>
    %18 = vector.broadcast %17 : vector<8x1xf32> to vector<8x32xf32>
    %19 = arith.addf %16, %18 : vector<8x32xf32>
    %20 = vector.extract_strided_slice %15 {offsets = [0, 0], sizes = [8, 32], strides = [1, 1]} : vector<16x32xf32> to vector<8x32xf32>
    %c0_15 = arith.constant 0 : index
    %c0_16 = arith.constant 0 : index
    %c0_17 = arith.constant 0 : index
    %21 = vector.load %arg7[%c0_15, %c0_16, %c0_17] : memref<1x32x32xf32, #tpu.memory_space<vmem>>, vector<1x32x32xf32>
    %22 = vector.shape_cast %21 : vector<1x32x32xf32> to vector<32x32xf32>
    %cst_18 = arith.constant dense<0.000000e+00> : vector<8x32xf32>
    %23 = tpu.matmul %20, %22, %cst_18 {dimension_numbers = #tpu.dot_dimension_numbers<[1], [0], [0], [1], [0, 0, 1, 1], [], []>} : vector<8x32xf32>, vector<32x32xf32>, vector<8x32xf32> -> vector<8x32xf32>
    %24 = arith.addf %19, %23 : vector<8x32xf32>
    %cst_19 = arith.constant 0.000000e+00 : f32
    %25 = vector.broadcast %cst_19 : f32 to vector<8x32xf32>
    %26 = arith.maximumf %24, %25 : vector<8x32xf32>
    %c0_20 = arith.constant 0 : index
    %c0_21 = arith.constant 0 : index
    %27 = vector.load %arg5[%c0_20, %c0_21] : memref<8x4xf32, #tpu.memory_space<vmem>>, vector<8x4xf32>
    %cst_22 = arith.constant dense<0.000000e+00> : vector<8x32xf32>
    %28 = tpu.matmul %27, %0, %cst_22 {dimension_numbers = #tpu.dot_dimension_numbers<[1], [0], [0], [1], [0, 0, 1, 1], [], []>} : vector<8x4xf32>, vector<4x32xf32>, vector<8x32xf32> -> vector<8x32xf32>
    %c0_23 = arith.constant 0 : index
    %c0_24 = arith.constant 0 : index
    %29 = vector.load %arg6[%c0_23, %c0_24] : memref<8x1xf32, #tpu.memory_space<vmem>>, vector<8x1xf32>
    %30 = vector.broadcast %29 : vector<8x1xf32> to vector<8x32xf32>
    %31 = arith.addf %28, %30 : vector<8x32xf32>
    %32 = arith.addf %26, %31 : vector<8x32xf32>
    %cst_25 = arith.constant 0.000000e+00 : f32
    %33 = vector.broadcast %cst_25 : f32 to vector<8x32xf32>
    %34 = arith.maximumf %32, %33 : vector<8x32xf32>
    %c0_26 = arith.constant 0 : index
    %c0_27 = arith.constant 0 : index
    %35 = vector.load %arg8[%c0_26, %c0_27] : memref<16x8xf32, #tpu.memory_space<vmem>>, vector<16x8xf32>
    %cst_28 = arith.constant dense<0.000000e+00> : vector<16x32xf32>
    %36 = tpu.matmul %35, %34, %cst_28 {dimension_numbers = #tpu.dot_dimension_numbers<[1], [0], [0], [1], [0, 0, 1, 1], [], []>} : vector<16x8xf32>, vector<8x32xf32>, vector<16x32xf32> -> vector<16x32xf32>
    %37 = vector.extract_strided_slice %36 {offsets = [8, 0], sizes = [8, 32], strides = [1, 1]} : vector<16x32xf32> to vector<8x32xf32>
    %c0_29 = arith.constant 0 : index
    %c0_30 = arith.constant 0 : index
    %38 = vector.load %arg9[%c0_29, %c0_30] : memref<8x1xf32, #tpu.memory_space<vmem>>, vector<8x1xf32>
    %39 = vector.broadcast %38 : vector<8x1xf32> to vector<8x32xf32>
    %40 = arith.addf %37, %39 : vector<8x32xf32>
    %41 = vector.extract_strided_slice %36 {offsets = [0, 0], sizes = [8, 32], strides = [1, 1]} : vector<16x32xf32> to vector<8x32xf32>
    %c0_31 = arith.constant 0 : index
    %c0_32 = arith.constant 0 : index
    %c0_33 = arith.constant 0 : index
    %42 = vector.load %arg12[%c0_31, %c0_32, %c0_33] : memref<1x32x32xf32, #tpu.memory_space<vmem>>, vector<1x32x32xf32>
    %43 = vector.shape_cast %42 : vector<1x32x32xf32> to vector<32x32xf32>
    %cst_34 = arith.constant dense<0.000000e+00> : vector<8x32xf32>
    %44 = tpu.matmul %41, %43, %cst_34 {dimension_numbers = #tpu.dot_dimension_numbers<[1], [0], [0], [1], [0, 0, 1, 1], [], []>} : vector<8x32xf32>, vector<32x32xf32>, vector<8x32xf32> -> vector<8x32xf32>
    %45 = arith.addf %40, %44 : vector<8x32xf32>
    %cst_35 = arith.constant 0.000000e+00 : f32
    %46 = vector.broadcast %cst_35 : f32 to vector<8x32xf32>
    %47 = arith.maximumf %45, %46 : vector<8x32xf32>
    %c0_36 = arith.constant 0 : index
    %c0_37 = arith.constant 0 : index
    %48 = vector.load %arg10[%c0_36, %c0_37] : memref<16x8xf32, #tpu.memory_space<vmem>>, vector<16x8xf32>
    %cst_38 = arith.constant dense<0.000000e+00> : vector<16x32xf32>
    %49 = tpu.matmul %48, %47, %cst_38 {dimension_numbers = #tpu.dot_dimension_numbers<[1], [0], [0], [1], [0, 0, 1, 1], [], []>} : vector<16x8xf32>, vector<8x32xf32>, vector<16x32xf32> -> vector<16x32xf32>
    %50 = vector.extract_strided_slice %49 {offsets = [8, 0], sizes = [8, 32], strides = [1, 1]} : vector<16x32xf32> to vector<8x32xf32>
    %c0_39 = arith.constant 0 : index
    %c0_40 = arith.constant 0 : index
    %51 = vector.load %arg11[%c0_39, %c0_40] : memref<8x1xf32, #tpu.memory_space<vmem>>, vector<8x1xf32>
    %52 = vector.broadcast %51 : vector<8x1xf32> to vector<8x32xf32>
    %53 = arith.addf %50, %52 : vector<8x32xf32>
    %54 = vector.extract_strided_slice %49 {offsets = [0, 0], sizes = [8, 32], strides = [1, 1]} : vector<16x32xf32> to vector<8x32xf32>
    %c0_41 = arith.constant 0 : index
    %c0_42 = arith.constant 0 : index
    %c0_43 = arith.constant 0 : index
    %55 = vector.load %arg12[%c0_41, %c0_42, %c0_43] : memref<1x32x32xf32, #tpu.memory_space<vmem>>, vector<1x32x32xf32>
    %56 = vector.shape_cast %55 : vector<1x32x32xf32> to vector<32x32xf32>
    %cst_44 = arith.constant dense<0.000000e+00> : vector<8x32xf32>
    %57 = tpu.matmul %54, %56, %cst_44 {dimension_numbers = #tpu.dot_dimension_numbers<[1], [0], [0], [1], [0, 0, 1, 1], [], []>} : vector<8x32xf32>, vector<32x32xf32>, vector<8x32xf32> -> vector<8x32xf32>
    %58 = arith.addf %53, %57 : vector<8x32xf32>
    %cst_45 = arith.constant 0.000000e+00 : f32
    %59 = vector.broadcast %cst_45 : f32 to vector<8x32xf32>
    %60 = arith.maximumf %58, %59 : vector<8x32xf32>
    %61 = arith.addf %60, %34 : vector<8x32xf32>
    %cst_46 = arith.constant 0.000000e+00 : f32
    %62 = vector.broadcast %cst_46 : f32 to vector<8x32xf32>
    %63 = arith.maximumf %61, %62 : vector<8x32xf32>
    %c0_47 = arith.constant 0 : index
    %c0_48 = arith.constant 0 : index
    %64 = vector.load %arg13[%c0_47, %c0_48] : memref<32x2xf32, #tpu.memory_space<vmem>>, vector<32x2xf32>
    %cst_49 = arith.constant dense<0.000000e+00> : vector<8x2xf32>
    %65 = tpu.matmul %63, %64, %cst_49 {dimension_numbers = #tpu.dot_dimension_numbers<[1], [0], [0], [1], [0, 0, 1, 1], [], []>} : vector<8x32xf32>, vector<32x2xf32>, vector<8x2xf32> -> vector<8x2xf32>
    %c0_50 = arith.constant 0 : index
    %c0_51 = arith.constant 0 : index
    %66 = vector.load %arg14[%c0_50, %c0_51] : memref<6x8xf32, #tpu.memory_space<vmem>>, vector<6x8xf32>
    %cst_52 = arith.constant dense<0.000000e+00> : vector<6x2xf32>
    %67 = tpu.matmul %66, %65, %cst_52 {dimension_numbers = #tpu.dot_dimension_numbers<[1], [0], [0], [1], [0, 0, 1, 1], [], []>} : vector<6x8xf32>, vector<8x2xf32>, vector<6x2xf32> -> vector<6x2xf32>
    %c0_53 = arith.constant 0 : index
    %c0_54 = arith.constant 0 : index
    %68 = vector.load %arg15[%c0_53, %c0_54] : memref<6x1xf32, #tpu.memory_space<vmem>>, vector<6x1xf32>
    %69 = vector.broadcast %68 : vector<6x1xf32> to vector<6x2xf32>
    %70 = arith.addf %67, %69 : vector<6x2xf32>
    %c0_55 = arith.constant 0 : index
    %c0_56 = arith.constant 0 : index
    %71 = vector.load %arg16[%c0_55, %c0_56] : memref<6x2xf32, #tpu.memory_space<vmem>>, vector<6x2xf32>
    tpu.vector_store %arg16[%c0_55, %c0_56], %70 {strides = array<i32>} : memref<6x2xf32, #tpu.memory_space<vmem>>, vector<6x2xf32>,
    return
  }
}

</mosaic_0001>

<bundles_post_ra>
// kernel: _run_fused.1
= control target key start
LH: loop header
LB: loop body
LE: loop exit
PB: predicated region body
PF: predicated region fallthrough
CT: control target
= control target key end

     0   :  { %vm63_vm0 = vcmask 1043456   ;;  %vm56_vm1 = vcmask 31744   ;;  %v1155_v3 = vmov 0   ;;  %v1156_v4 = vmov 0.0|0.0   ;;  %s1378_s0 = inlined_call_operand.vmem [shape: f32[4,32], index: 0, kind: input, shape index: {}]   ;;  %s1379_s1 = inlined_call_operand.vmem [shape: f32[16,4], index: 1, kind: input, shape index: {}]   ;;  %s1380_s2 = inlined_call_operand.vmem [shape: f32[8,1], index: 2, kind: input, shape index: {}]   ;;  %s1381_s7 = inlined_call_operand.vmem [shape: f32[1,32,32], index: 7, kind: input, shape index: {}]   ;;  %s1382_s4 = inlined_call_operand.vmem [shape: f32[8,1], index: 4, kind: input, shape index: {}]   ;;  %s1383_s11 = inlined_call_operand.vmem [shape: f32[8,1], index: 11, kind: input, shape index: {}]   ;;  %s1384_s3 = inlined_call_operand.vmem [shape: f32[16,8], index: 3, kind: input, shape index: {}]   ;;  %s1385_s5 = inlined_call_operand.vmem [shape: f32[8,4], index: 5, kind: input, shape index: {}]   ;;  %s1386_s6 = inlined_call_operand.vmem [shape: f32[8,1], index: 6, kind: input, shape index: {}]   ;;  %s1387_s9 = inlined_call_operand.vmem [shape: f32[8,1], index: 9, kind: input, shape index: {}]   ;;  %s1388_s15 = inlined_call_operand.vmem [shape: f32[6,1], index: 15, kind: input, shape index: {}]   ;;  %s1389_s8 = inlined_call_operand.vmem [shape: f32[16,8], index: 8, kind: input, shape index: {}]   ;;  %s1390_s12 = inlined_call_operand.vmem [shape: f32[1,32,32], index: 12, kind: input, shape index: {}]   ;;  %s1391_s10 = inlined_call_operand.vmem [shape: f32[16,8], index: 10, kind: input, shape index: {}]   ;;  %s1392_s13 = inlined_call_operand.vmem [shape: f32[32,2], index: 13, kind: input, shape index: {}]   ;;  %s1393_s14 = inlined_call_operand.vmem [shape: f32[6,8], index: 14, kind: input, shape index: {}]   ;;  %s1394_s16 = inlined_call_operand.vmem [shape: f32[6,2], index: 16, kind: output, shape index: {}]  }
   0x1   :  { %1395 = sst [smem:[#allocation2_spill]] %s1378_s0  ;;  %v54_v1 = vld [vmem:[%s1379_s1] sm:$0xff]  ;;  %v55_v2 = vld [vmem:[%s1379_s1 + $0x8] sm:$0xff]  ;;  %1153 = vset.pattern.permute.xlu0 %v1155_v3  ;;  %1119 = vmatprep.subr.bf16.mxu1 %v1156_v4  ;;  %v151_v9 = vld [vmem:[%s1381_s7 + $0x10] sm:$0xff]  ;;  %vm1157_vm2 = vmmov 0   ;;  %v1158_v12 = vmov 0.0  }
   0x2   :  { %s1396_s23 = sld [smem:[#allocation2_spill]]  ;;  %1036 = vmatprep.mubr.msk.f32.mxu0 %vm56_vm1, %v54_v1  ;;  %v142_v5 = vld [vmem:[%s1380_s2] sm:$0xff]  ;;  %v150_v7 = vld [vmem:[%s1381_s7 + $0x8] sm:$0xff]  ;;  %v152_v10 = vld [vmem:[%s1381_s7 + $0x18] sm:$0xff]  ;;  %1154 = vset.pattern.permute.xlu1 %v1155_v3  ;;  %vm153_vm3 = vcmask 261120   ;;  %vm231_vm4 = vcmask 64512  }
   0x3   :  { %v149_v6 = vld [vmem:[%s1381_s7] sm:$0xff]  ;;  %145 = vperm.xlu0 %1153, %v142_v5   ;;  %v1123_v11 = vpack.c.bf16 %v152_v10, %v151_v9  ;;  %1047 = vmatprep.mubr.msk.f32.mxu1 %vm1157_vm2, %v1158_v12  ;;  %v230_v24 = vld [vmem:[%s1384_s3 + $0x8] sm:$0xff]  ;;  %v569_v36 = vld [vmem:[%s1390_s12 + $0x10] sm:$0xff]  ;;  %vm970_vm5 = vcmask 13312  }
   0x4   :  { %v1120_v8 = vpack.c.bf16 %v150_v7, %v149_v6  ;;  %v313_v13 = vld [vmem:[%s1382_s4] sm:$0xff]  ;;  %v568_v35 = vld [vmem:[%s1390_s12 + $0x8] sm:$0xff]  ;;  %v570_v38 = vld [vmem:[%s1390_s12 + $0x18] sm:$0xff] }
   0x5   :  { %v729_v14 = vld [vmem:[%s1383_s11] sm:$0xff]  ;;  %v1135_v39 = vpack.c.bf16 %v570_v38, %v569_v36  ;;  %v478_v50 = vld [vmem:[%s1389_s8 + $0x8] sm:$0xff]  ;;  %v816_v3 = vld [vmem:[%s1392_s13 + $0x18] sm:$0xff] }
   0x6   :  { %1121 = vmatpush3.bf16.msra.mxu1 %v1120_v8  ;;  %v229_v17 = vld [vmem:[%s1384_s3] sm:$0xff]  ;;  %v647_v60 = vld [vmem:[%s1391_s10 + $0x8] sm:$0xff] }
   0x7   :  { %1122 = vmatprep.subr.bf16.mxu1 %v1156_v4  ;;  %316 = vperm.xlu0 %1153, %v313_v13   ;;  %v395_v25 = vld [vmem:[%s1385_s5] sm:$0xff] }
   0x8   :  { %v53_v0 = vld [vmem:[%s1396_s23] sm:$0xf] }
   0x9   :  { %1034 = vmatprep.subr.msk.mxu0 %vm63_vm0, %v53_v0  ;;  %v396_v26 = vld [vmem:[%s1386_s6] sm:$0xff] }
   0xa   :  { %1035 = vmatpush3.msk.msra.mxu0 %vm63_vm0, %v53_v0  ;;  %1124 = vmatpush3.bf16.msra.mxu1 %v1123_v11  ;;  %v560_v27 = vld [vmem:[%s1387_s9] sm:$0xff] }
   0xb   :  { %1037 = vmatmul.mubr.msk.f32.vlgmr.msra.gmra.mrb[0].mxu0 %vm56_vm1, %v55_v2  ;;  %1066 = vmatprep.subr.mxu1 %v1158_v12  ;;  %v891_v28 = vld [vmem:[%s1388_s15] sm:$0x3f]  ;;  %v815_v2 = vld [vmem:[%s1392_s13 + $0x10] sm:$0xff] }
   0xc   :  { %732 = vperm.xlu0 %1153, %v729_v14   ;;  %1052 = vmatprep.mubr.msk.f32.mxu0 %vm231_vm4, %v229_v17  ;;  %v477_v33 = vld [vmem:[%s1389_s8] sm:$0xff]  ;;  %v1147_v5 = vpack.c.bf16 %v816_v3, %v815_v2 }
   0xd   :  { %399 = vperm.xlu1 %1154, %v396_v26   ;;  %v567_v34 = vld [vmem:[%s1390_s12] sm:$0xff] }
   0xe   :  { %v1132_v37 = vpack.c.bf16 %v568_v35, %v567_v34  ;;  %v646_v53 = vld [vmem:[%s1391_s10] sm:$0xff] }
   0xf   :  { %v813_v63 = vld [vmem:[%s1392_s13] sm:$0xff] }
  0x11   :  { %563 = vperm.xlu1 %1154, %v560_v27  }
  0x15   :  { %894 = vperm.xlu1 %1154, %v891_v28  }
  0x82   :  { %v146_v18 = vpop.permute.xlu0 %145 }
  0x86   :  { %v317_v40 = vpop.permute.xlu0 %316 }
  0x8b   :  { %v733_v6 = vpop.permute.xlu0 %732 }
  0x8c   :  { %v400_v42 = vpop.permute.xlu1 %399 }
  0x90   :  { %v564_v54 = vpop.permute.xlu1 %563 }
  0xde   :  { %v1038_v15 = vpop.f32.mrb[0].mxu0 }
  0xdf   :  { %v133_v16 = vpop.f32.mrb[1].mxu0  ;;  %v148_v19 = vadd.f32 %v1038_v15, %v146_v18 }
  0xe0   :  { %1048 = vmatmul.mubr.msk.f32.vlgmr.msra.gmra.mrb[0].mxu1 %vm153_vm3, %v133_v16  ;;  %v895_v16 = vpop.permute.xlu1 %894 }
  0xe1   :  { %1067 = vmatpush3.msk.msra.mxu1 %vm63_vm0, %v53_v0  ;;  %1068 = vmatprep.mubr.msk.f32.mxu1 %vm1157_vm2, %v1158_v12  ;;  %v814_v0 = vld [vmem:[%s1392_s13 + $0x8] sm:$0xff] }
  0xe2   :  { %v1144_v1 = vpack.c.bf16 %v814_v0, %v813_v63 }
  0xe4   :  { %1069 = vmatmul.mubr.msk.f32.vlgmr.msra.gmra.mrb[2].mxu1 %vm56_vm1, %v395_v25 }
  0xe5   :  { %1073 = vmatprep.mubr.msk.f32.mxu1 %vm231_vm4, %v477_v33 }
 0x1b3   :  { %v223_v20 = vpop.f32.mrb[0].mxu1 }
 0x1b4   :  { %v227_v21 = vadd.f32 %v223_v20, %v148_v19  ;;  %v1049_v22 = vpop.f32.mrb[1].mxu1 }
 0x1b6   :  { %v228_v23 = vmax.f32 %v227_v21, 0.0 }
 0x1b7   :  { %v471_v31 = vpop.f32.mrb[2].mxu1 }
 0x1b8   :  { %1050 = vmatprep.subr.mxu0 %v228_v23  ;;  %v1070_v32 = vpop.f32.mrb[3].mxu1  ;;  %v472_v46 = vadd.f32 %v471_v31, %v400_v42 }
 0x1b9   :  { %1051 = vmatpush3.msra.mxu0 %v228_v23 }
 0x1ba   :  { %1053 = vmatmul.mubr.msk.f32.vlgmr.msra.gmra.mrb[2].mxu0 %vm231_vm4, %v230_v24  ;;  %1125 = vmatprep.subr.bf16.mxu0 %v1156_v4 }
 0x1bb   :  { %1127 = vmatpush3.bf16.msra.mxu0 %v1120_v8  ;;  %1063 = vmatprep.mubr.msk.f32.mxu0 %vm1157_vm2, %v1158_v12 }
 0x1bc   :  { %1128 = vmatprep.subr.bf16.mxu0 %v1156_v4 }
 0x1bf   :  { %1130 = vmatpush3.bf16.msra.mxu0 %v1123_v11 }
 0x1c0   :  { %1131 = vmatprep.subr.bf16.mxu0 %v1156_v4 }
 0x28d   :  { %v1054_v29 = vpop.f32.mrb[2].mxu0 }
 0x28e   :  { %v304_v30 = vpop.f32.mrb[3].mxu0  ;;  %v319_v41 = vadd.f32 %v1054_v29, %v317_v40 }
 0x28f   :  { %1064 = vmatmul.mubr.msk.f32.vlgmr.msra.gmra.mrb[4].mxu0 %vm153_vm3, %v304_v30 }
 0x290   :  { %1084 = vmatprep.mubr.msk.f32.mxu0 %vm1157_vm2, %v1158_v12  ;;  %1133 = vmatpush3.bf16.msra.mxu0 %v1132_v37 }
 0x291   :  { %1134 = vmatprep.subr.bf16.mxu0 %v1156_v4 }
 0x294   :  { %1136 = vmatpush3.bf16.msra.mxu0 %v1135_v39 }
 0x295   :  { %1143 = vmatprep.subr.bf16.mxu0 %v1156_v4 }
 0x362   :  { %v389_v43 = vpop.f32.mrb[4].mxu0 }
 0x363   :  { %v393_v44 = vadd.f32 %v389_v43, %v319_v41  ;;  %v1065_v45 = vpop.f32.mrb[5].mxu0 }
 0x365   :  { %v394_v47 = vmax.f32 %v393_v44, 0.0 }
 0x367   :  { %v475_v48 = vadd.f32 %v472_v46, %v394_v47 }
 0x369   :  { %v476_v49 = vmax.f32 %v475_v48, 0.0 }
 0x36b   :  { %1071 = vmatprep.subr.mxu1 %v476_v49 }
 0x36c   :  { %1072 = vmatpush3.msra.mxu1 %v476_v49 }
 0x36d   :  { %1074 = vmatmul.mubr.msk.f32.vlgmr.msra.gmra.mrb[4].mxu1 %vm231_vm4, %v478_v50 }
 0x36e   :  { %1089 = vmatprep.mubr.msk.f32.mxu1 %vm231_vm4, %v646_v53 }
 0x440   :  { %v1075_v51 = vpop.f32.mrb[4].mxu1 }
 0x441   :  { %v551_v52 = vpop.f32.mrb[5].mxu1  ;;  %v566_v55 = vadd.f32 %v1075_v51, %v564_v54 }
 0x442   :  { %1085 = vmatmul.mubr.msk.f32.vlgmr.msra.gmra.mrb[6].mxu0 %vm153_vm3, %v551_v52 }
 0x443   :  { %1111 = vmatprep.mubr.msk.f32.mxu0 %vm1157_vm2, %v1158_v12  ;;  %1145 = vmatpush3.bf16.msra.mxu0 %v1144_v1 }
 0x444   :  { %1146 = vmatprep.subr.bf16.mxu0 %v1156_v4 }
 0x447   :  { %1148 = vmatpush3.bf16.msra.mxu0 %v1147_v5 }
 0x515   :  { %v640_v56 = vpop.f32.mrb[6].mxu0 }
 0x516   :  { %v644_v57 = vadd.f32 %v640_v56, %v566_v55  ;;  %v1086_v58 = vpop.f32.mrb[7].mxu0 }
 0x518   :  { %v645_v59 = vmax.f32 %v644_v57, 0.0 }
 0x51a   :  { %1087 = vmatprep.subr.mxu1 %v645_v59 }
 0x51b   :  { %1088 = vmatpush3.msra.mxu1 %v645_v59 }
 0x51c   :  { %1090 = vmatmul.mubr.msk.f32.vlgmr.msra.gmra.mrb[6].mxu1 %vm231_vm4, %v647_v60  ;;  %1137 = vmatprep.subr.bf16.mxu1 %v1156_v4 }
 0x51d   :  { %1139 = vmatpush3.bf16.msra.mxu1 %v1132_v37  ;;  %1100 = vmatprep.mubr.msk.f32.mxu1 %vm1157_vm2, %v1158_v12 }
 0x51e   :  { %1140 = vmatprep.subr.bf16.mxu1 %v1156_v4  ;;  %v890_v4 = vld [vmem:[%s1393_s14] sm:$0x3f] }
 0x521   :  { %1142 = vmatpush3.bf16.msra.mxu1 %v1135_v39 }
 0x522   :  { %1114 = vmatprep.subr.mxu1 %v1158_v12 }
 0x5ef   :  { %v1091_v61 = vpop.f32.mrb[6].mxu1 }
 0x5f0   :  { %v720_v62 = vpop.f32.mrb[7].mxu1  ;;  %v735_v7 = vadd.f32 %v1091_v61, %v733_v6 }
 0x5f1   :  { %1101 = vmatmul.mubr.msk.f32.vlgmr.msra.gmra.mrb[8].mxu1 %vm153_vm3, %v720_v62 }
 0x5f2   :  { %1116 = vmatprep.mubr.msk.f32.mxu1 %vm1157_vm2, %v1158_v12 }
 0x6c4   :  { %v805_v8 = vpop.f32.mrb[8].mxu1 }
 0x6c5   :  { %v809_v9 = vadd.f32 %v805_v8, %v735_v7  ;;  %v1102_v10 = vpop.f32.mrb[9].mxu1 }
 0x6c7   :  { %v810_v11 = vmax.f32 %v809_v9, 0.0 }
 0x6c9   :  { %v811_v12 = vadd.f32 %v810_v11, %v476_v49 }
 0x6cb   :  { %v812_v13 = vmax.f32 %v811_v12, 0.0 }
 0x6cd   :  { %1112 = vmatmul.mubr.msk.f32.vlgmr.msra.gmra.mrb[8].mxu0 %vm153_vm3, %v812_v13 }
 0x7a0   :  { %v886_v14 = vpop.f32.mrb[8].mxu0 }
 0x7a1   :  { %v1113_v15 = vpop.f32.mrb[9].mxu0  ;;  %1115 = vmatpush3.msra.mxu1 %v886_v14 }
 0x7a2   :  { %1117 = vmatmul.mubr.msk.f32.vlgmr.msra.gmra.mrb[10].mxu1 %vm231_vm4, %v890_v4 }
 0x875   :  { %v966_v17 = vpop.f32.mrb[10].mxu1 }
 0x876   :  { %v967_v18 = vadd.f32 %v966_v17, %v895_v16  ;;  %v1118_v19 = vpop.f32.mrb[11].mxu1 }
 0x878   :  { %971 = vst.msk [vmem:[%s1394_s16] sm:$0x3f] %vm970_vm5, %v967_v18 }

</bundles_post_ra>
